<compile_context>
chip_gen: v7x
topology: tpu7x:2x2x1
jax: 0.10.0
libtpu: 0.0.40
codegen_flags: <defaults>
</compile_context>

<pallas_src>
import functools
import math

import numpy as np
import jax
import jax.numpy as jnp
from jax.experimental import pallas as pl
from jax.experimental.pallas import tpu as pltpu

EPS = 1e-05
LOG_SQRT_2PI = 0.5 * math.log(2.0 * math.pi)


# --------------------------------------------------------------------------- #
# Kernels
# --------------------------------------------------------------------------- #

def _posterior_kernel_onehot(prec_mean_ref, precision_ref, eps_ref,
                             expand_ref, seg_ref, samples_ref, logp_ref):
    """Lane-dense slab path (Z not a lane multiple).

    prec_mean_ref, precision_ref : [TB, Z]
    eps_ref, samples_ref         : [TB, S*Z]   row-major slabs (z fastest)
    expand_ref                   : [Z, S*Z]    one-hot: expand[z, s*Z + z] = 1
    seg_ref                      : [S*Z, S]    one-hot: seg[s*Z + z, s]    = 1
    logp_ref                     : [TB, S]
    """
    tb, z_dim = precision_ref.shape

    denom = precision_ref[...] + EPS                           # [TB, Z]
    inv = pl.reciprocal(denom)                                 # exact 1/(prec+EPS)
    mean = prec_mean_ref[...] * inv                            # [TB, Z]
    std = jax.lax.rsqrt(denom)                                 # [TB, Z]
    eps = eps_ref[...]                                         # [TB, S*Z]

    hi = jax.lax.Precision.HIGHEST
    # Fused broadcast: a single one-hot matmul expands both mean and std along
    # the flattened (s, z) axis with period Z (halves MXU passes vs. two dots).
    ms = jnp.concatenate([mean, std], axis=0)                  # [2*TB, Z]
    ms_b = jnp.dot(ms, expand_ref[...], precision=hi,
                   preferred_element_type=jnp.float32)         # [2*TB, S*Z]
    mean_b = ms_b[:tb]
    std_b = ms_b[tb:]

    samples_ref[...] = (mean_b + std_b * eps).astype(samples_ref.dtype)

    # log_prob[b,s] = -0.5*sum_z eps^2 + 0.5*sum_z log(denom) - Z*log(sqrt(2pi))
    sum_sq = jnp.dot(eps * eps, seg_ref[...], precision=hi,
                     preferred_element_type=jnp.float32)       # [TB, S]
    log_det = jnp.sum(jnp.log(denom), axis=1, keepdims=True)   # [TB, 1]
    logp_ref[...] = (-0.5 * sum_sq + 0.5 * log_det
                     - z_dim * LOG_SQRT_2PI).astype(logp_ref.dtype)


def _posterior_kernel_3d(prec_mean_ref, precision_ref, eps_ref,
                         samples_ref, logp_ref):
    """3-D path (Z a lane multiple, or Z large): sublane broadcast, no constants.

    prec_mean_ref, precision_ref : [TB, 1, Z]
    eps_ref, samples_ref         : [TB, S, Z]
    logp_ref                     : [TB, S, 1]
    """
    z_dim = precision_ref.shape[2]

    denom = precision_ref[...] + EPS                           # [TB, 1, Z]
    inv = pl.reciprocal(denom)
    mean = prec_mean_ref[...] * inv                            # [TB, 1, Z]
    std = jax.lax.rsqrt(denom)                                 # [TB, 1, Z]
    eps = eps_ref[...]                                         # [TB, S, Z]

    samples_ref[...] = (mean + std * eps).astype(samples_ref.dtype)

    sum_sq = jnp.sum(eps * eps, axis=2, keepdims=True)         # [TB, S, 1]
    log_det = jnp.sum(jnp.log(denom), axis=2, keepdims=True)   # [TB, 1, 1]
    logp_ref[...] = (-0.5 * sum_sq + 0.5 * log_det
                     - z_dim * LOG_SQRT_2PI).astype(logp_ref.dtype)


# --------------------------------------------------------------------------- #
# Host-side helpers
# --------------------------------------------------------------------------- #

def _round_up(x, m):
    return -(-x // m) * m


def _vmem_limit_bytes():
    """Generation-aware scoped-VMEM limit (~75% of physical, clamped)."""
    try:
        cap = int(pltpu.get_tpu_info().vmem_capacity_bytes)
    except Exception:
        cap = 64 * 1024 * 1024
    return int(min(max(cap * 3 // 4, 32 * 1024 * 1024), 100 * 1024 * 1024))


def _choose_block_b(B, S, Z, vmem_limit):
    """Rows per grid step.

    Pick the biggest multiple of 8 whose double-buffered eps + samples slabs fit
    comfortably in the VMEM budget, while keeping at least two grid steps
    (preferably an even count) so both v7x TensorCores get balanced work.
    """
    row_bytes = 2 * S * Z * 4                       # eps tile + samples tile, f32
    target = max(row_bytes * 8, vmem_limit // 5)    # amortize ~0.35us/step overhead
    bb = max(8, (target // row_bytes) // 8 * 8)
    bb = min(bb, _round_up(B, 8))
    if B > 8:
        # at least two grid steps
        bb = min(bb, _round_up(_round_up(B, 2) // 2, 8))
        steps = -(-B // bb)
        if steps > 1 and steps % 2 == 1:
            alt = _round_up(-(-B // (steps + 1)), 8)
            if 0 < alt <= bb:
                bb = alt
    return int(bb)


@functools.lru_cache(maxsize=None)
def _one_hot_constants(S, Z):
    """Constant one-hot selection matrices for the slab path (cached per (S,Z))."""
    sz = S * Z
    z_of_col = np.arange(sz) % Z
    s_of_col = np.arange(sz) // Z
    expand = (np.arange(Z)[:, None] == z_of_col[None, :]).astype(np.float32)  # [Z, S*Z]
    seg = (s_of_col[:, None] == np.arange(S)[None, :]).astype(np.float32)     # [S*Z, S]
    return jnp.asarray(expand), jnp.asarray(seg)


# --------------------------------------------------------------------------- #
# Wrapper
# --------------------------------------------------------------------------- #

def diag_gaussian_posterior_forward(prec_mean, precision, eps, *, block_b=None):
    """prec_mean/precision: [B, Z]; eps: [B, S, Z] standard-normal noise.

    Returns (samples [B, S, Z], log_prob [B, S]) — the PyTorch module's
    forward(..., transpose=True) outputs, with the reparameterization noise
    passed in explicitly.
    """
    prec_mean = jnp.asarray(prec_mean, jnp.float32)
    precision = jnp.asarray(precision, jnp.float32)
    eps = jnp.asarray(eps, jnp.float32)

    B, Z = prec_mean.shape
    assert precision.shape == (B, Z)
    _, S, _ = eps.shape
    assert eps.shape == (B, S, Z)

    vmem_limit = _vmem_limit_bytes()
    if block_b is None or block_b <= 0 or block_b % 8 != 0:
        block_b = _choose_block_b(B, S, Z, vmem_limit)

    grid_len = int(pl.cdiv(B, block_b))
    B_pad = grid_len * block_b
    if B_pad != B:
        pad = B_pad - B
        prec_mean = jnp.pad(prec_mean, ((0, pad), (0, 0)))
        precision = jnp.pad(precision, ((0, pad), (0, 0)))   # zeros -> denom=EPS, finite
        eps = jnp.pad(eps, ((0, pad), (0, 0), (0, 0)))

    compiler_params = pltpu.CompilerParams(
        dimension_semantics=("parallel",),
        vmem_limit_bytes=vmem_limit,
    )

    # Route: lane-multiple Z (or an `expand` matrix that would eat VMEM / MXU)
    # -> 3-D sublane-broadcast path; otherwise lane-dense slab + one-hot MXU.
    use_3d = (Z % 128 == 0) or (4 * S * Z * Z > 2 * 1024 * 1024)

    if use_3d:
        samples, log_prob3 = pl.pallas_call(
            _posterior_kernel_3d,
            grid=(grid_len,),
            in_specs=[
                pl.BlockSpec((block_b, 1, Z), lambda i: (i, 0, 0)),   # prec_mean
                pl.BlockSpec((block_b, 1, Z), lambda i: (i, 0, 0)),   # precision
                pl.BlockSpec((block_b, S, Z), lambda i: (i, 0, 0)),   # eps
            ],
            out_specs=(
                pl.BlockSpec((block_b, S, Z), lambda i: (i, 0, 0)),   # samples
                pl.BlockSpec((block_b, S, 1), lambda i: (i, 0, 0)),   # log_prob
            ),
            out_shape=(
                jax.ShapeDtypeStruct((B_pad, S, Z), jnp.float32),
                jax.ShapeDtypeStruct((B_pad, S, 1), jnp.float32),
            ),
            compiler_params=compiler_params,
        )(prec_mean.reshape(B_pad, 1, Z), precision.reshape(B_pad, 1, Z), eps)
        return samples[:B], log_prob3[:B, :, 0]

    SZ = S * Z
    expand, seg = _one_hot_constants(S, Z)
    eps_flat = eps.reshape(B_pad, SZ)   # row-major: free reshape, lane-dense slab

    samples_flat, log_prob = pl.pallas_call(
        _posterior_kernel_onehot,
        grid=(grid_len,),
        in_specs=[
            pl.BlockSpec((block_b, Z), lambda i: (i, 0)),     # prec_mean
            pl.BlockSpec((block_b, Z), lambda i: (i, 0)),     # precision
            pl.BlockSpec((block_b, SZ), lambda i: (i, 0)),    # eps (flattened)
            pl.BlockSpec((Z, SZ), lambda i: (0, 0)),          # expand (constant)
            pl.BlockSpec((SZ, S), lambda i: (0, 0)),          # seg (constant)
        ],
        out_specs=(
            pl.BlockSpec((block_b, SZ), lambda i: (i, 0)),    # samples (flattened)
            pl.BlockSpec((block_b, S), lambda i: (i, 0)),     # log_prob
        ),
        out_shape=(
            jax.ShapeDtypeStruct((B_pad, SZ), jnp.float32),
            jax.ShapeDtypeStruct((B_pad, S), jnp.float32),
        ),
        compiler_params=compiler_params,
    )(prec_mean, precision, eps_flat, expand, seg)

    return samples_flat[:B].reshape(B, S, Z), log_prob[:B]


# --------------------------------------------------------------------------- #
# Reference & self-test
# --------------------------------------------------------------------------- #

def _reference_forward(prec_mean, precision, eps):
    denom = precision + EPS
    mean = prec_mean / denom
    std = jnp.sqrt(1.0 / denom)
    samples = mean[:, None, :] + std[:, None, :] * eps
    logp = (-0.5 * ((samples - mean[:, None, :]) / std[:, None, :]) ** 2
            - jnp.log(std)[:, None, :] - LOG_SQRT_2PI)
    return samples, jnp.sum(logp, axis=2)


if __name__ == "__main__":
    key = jax.random.PRNGKey(0)

    def _check(B, S, Z, subkey):
        k_pm, k_prec, k_eps = jax.random.split(subkey, 3)
        prec_mean = jax.random.normal(k_pm, (B, Z), dtype=jnp.float32)
        # precision must be positive (inverse variance)
        precision = jnp.exp(0.5 * jax.random.normal(k_prec, (B, Z), dtype=jnp.float32))
        # standard-normal reparameterization noise (the distribution's rsample eps)
        eps = jax.random.normal(k_eps, (B, S, Z), dtype=jnp.float32)

        samples, log_prob = diag_gaussian_posterior_forward(prec_mean, precision, eps)
        samples = jax.block_until_ready(samples)
        log_prob = jax.block_until_ready(log_prob)

        ref_samples, ref_logp = _reference_forward(prec_mean, precision, eps)
        assert samples.shape == (B, S, Z)
        assert log_prob.shape == (B, S)
        assert jnp.allclose(samples, ref_samples, atol=1e-5, rtol=1e-5), \
            float(jnp.max(jnp.abs(samples - ref_samples)))
        assert jnp.allclose(log_prob, ref_logp, atol=1e-4, rtol=1e-4), \
            float(jnp.max(jnp.abs(log_prob - ref_logp)))

    k1, k2, k3 = jax.random.split(key, 3)
    _check(16, 8, 32, k1)    # Z < 128  -> lane-dense slab + fused one-hot matmul path
    _check(16, 8, 128, k2)   # Z % 128 == 0 -> 3-D sublane-broadcast path (no constants)
    _check(10, 8, 32, k3)    # awkward B -> cdiv + padded tail

    print("KERNEL_OK")
</pallas_src>

<mosaic_0001>
module attributes {stable_mosaic.version = 11 : i64} {
  func.func @_posterior_kernel_onehot(%arg0: i32, %arg1: memref<8x32xf32, #tpu.memory_space<vmem>>, %arg2: memref<8x32xf32, #tpu.memory_space<vmem>>, %arg3: memref<8x256xf32, #tpu.memory_space<vmem>>, %arg4: memref<32x256xf32, #tpu.memory_space<vmem>>, %arg5: memref<256x8xf32, #tpu.memory_space<vmem>>, %arg6: memref<8x256xf32, #tpu.memory_space<vmem>>, %arg7: memref<8x8xf32, #tpu.memory_space<vmem>>) attributes {dimension_semantics = [#tpu.dimension_semantics<parallel>], iteration_bounds = array<i64: 2>, scalar_prefetch = 0 : i64, scratch_operands = 0 : i64, tpu.core_type = #tpu.core_type<tc>, window_params = [{transform_indices = @transform_0, window_bounds = array<i64: 8, 32>}, {transform_indices = @transform_1, window_bounds = array<i64: 8, 32>}, {transform_indices = @transform_2, window_bounds = array<i64: 8, 256>}, {pipeline_mode = #tpu.pipeline_mode<synchronous>, transform_indices = @transform_3, window_bounds = array<i64: 32, 256>}, {pipeline_mode = #tpu.pipeline_mode<synchronous>, transform_indices = @transform_4, window_bounds = array<i64: 256, 8>}, {transform_indices = @transform_5, window_bounds = array<i64: 8, 256>}, {transform_indices = @transform_6, window_bounds = array<i64: 8, 8>}]} {
    %c0 = arith.constant 0 : index
    %c0_0 = arith.constant 0 : index
    %0 = vector.load %arg2[%c0, %c0_0] : memref<8x32xf32, #tpu.memory_space<vmem>>, vector<8x32xf32>
    %cst = arith.constant 9.99999974E-6 : f32
    %1 = vector.broadcast %cst : f32 to vector<8x32xf32>
    %2 = arith.addf %0, %1 : vector<8x32xf32>
    %3 = tpu.reciprocal %2 : vector<8x32xf32> -> vector<8x32xf32>
    %c0_1 = arith.constant 0 : index
    %c0_2 = arith.constant 0 : index
    %4 = vector.load %arg1[%c0_1, %c0_2] : memref<8x32xf32, #tpu.memory_space<vmem>>, vector<8x32xf32>
    %5 = arith.mulf %4, %3 : vector<8x32xf32>
    %6 = math.rsqrt %2 : vector<8x32xf32>
    %c0_3 = arith.constant 0 : index
    %c0_4 = arith.constant 0 : index
    %7 = vector.load %arg3[%c0_3, %c0_4] : memref<8x256xf32, #tpu.memory_space<vmem>>, vector<8x256xf32>
    %8 = tpu.concatenate %5, %6 in 0 : vector<8x32xf32>, vector<8x32xf32> -> vector<16x32xf32>
    %c0_5 = arith.constant 0 : index
    %c0_6 = arith.constant 0 : index
    %9 = vector.load %arg4[%c0_5, %c0_6] : memref<32x256xf32, #tpu.memory_space<vmem>>, vector<32x256xf32>
    %cst_7 = arith.constant dense<0.000000e+00> : vector<16x256xf32>
    %10 = tpu.matmul %8, %9, %cst_7 {dimension_numbers = #tpu.dot_dimension_numbers<[1], [0], [0], [1], [0, 0, 1, 1], [], []>, precision = #tpu.contract_precision<fp32>} : vector<16x32xf32>, vector<32x256xf32>, vector<16x256xf32> -> vector<16x256xf32>
    %11 = vector.extract_strided_slice %10 {offsets = [0, 0], sizes = [8, 256], strides = [1, 1]} : vector<16x256xf32> to vector<8x256xf32>
    %12 = vector.extract_strided_slice %10 {offsets = [8, 0], sizes = [8, 256], strides = [1, 1]} : vector<16x256xf32> to vector<8x256xf32>
    %13 = arith.mulf %12, %7 : vector<8x256xf32>
    %14 = arith.addf %11, %13 : vector<8x256xf32>
    %c0_8 = arith.constant 0 : index
    %c0_9 = arith.constant 0 : index
    %15 = vector.load %arg6[%c0_8, %c0_9] : memref<8x256xf32, #tpu.memory_space<vmem>>, vector<8x256xf32>
    tpu.vector_store %arg6[%c0_8, %c0_9], %14 {strides = array<i32>} : memref<8x256xf32, #tpu.memory_space<vmem>>, vector<8x256xf32>,
    %16 = arith.mulf %7, %7 : vector<8x256xf32>
    %c0_10 = arith.constant 0 : index
    %c0_11 = arith.constant 0 : index
    %17 = vector.load %arg5[%c0_10, %c0_11] : memref<256x8xf32, #tpu.memory_space<vmem>>, vector<256x8xf32>
    %cst_12 = arith.constant dense<0.000000e+00> : vector<8x8xf32>
    %18 = tpu.matmul %16, %17, %cst_12 {dimension_numbers = #tpu.dot_dimension_numbers<[1], [0], [0], [1], [0, 0, 1, 1], [], []>, precision = #tpu.contract_precision<fp32>} : vector<8x256xf32>, vector<256x8xf32>, vector<8x8xf32> -> vector<8x8xf32>
    %19 = math.log %2 : vector<8x32xf32>
    %cst_13 = arith.constant dense<0.000000e+00> : vector<8xf32>
    %20 = vector.multi_reduction <add>, %19, %cst_13 [1] : vector<8x32xf32> to vector<8xf32>
    %21 = vector.shape_cast %20 : vector<8xf32> to vector<8x1xf32>
    %cst_14 = arith.constant -5.000000e-01 : f32
    %22 = vector.broadcast %cst_14 : f32 to vector<8x8xf32>
    %23 = arith.mulf %22, %18 : vector<8x8xf32>
    %cst_15 = arith.constant 5.000000e-01 : f32
    %24 = vector.broadcast %cst_15 : f32 to vector<8x1xf32>
    %25 = arith.mulf %24, %21 : vector<8x1xf32>
    %26 = vector.broadcast %25 : vector<8x1xf32> to vector<8x8xf32>
    %27 = arith.addf %23, %26 : vector<8x8xf32>
    %cst_16 = arith.constant 29.4060326 : f32
    %28 = vector.broadcast %cst_16 : f32 to vector<8x8xf32>
    %29 = arith.subf %27, %28 : vector<8x8xf32>
    %c0_17 = arith.constant 0 : index
    %c0_18 = arith.constant 0 : index
    %30 = vector.load %arg7[%c0_17, %c0_18] : memref<8x8xf32, #tpu.memory_space<vmem>>, vector<8x8xf32>
    tpu.vector_store %arg7[%c0_17, %c0_18], %29 {strides = array<i32>} : memref<8x8xf32, #tpu.memory_space<vmem>>, vector<8x8xf32>,
    return
  }
  func.func @transform_0(%arg0: i32) -> (i32, i32) {
    %c0_i32 = arith.constant 0 : i32
    %c0_i32_0 = arith.constant 0 : i32
    return %arg0, %c0_i32 : i32, i32
  }
  func.func @transform_1(%arg0: i32) -> (i32, i32) {
    %c0_i32 = arith.constant 0 : i32
    %c0_i32_0 = arith.constant 0 : i32
    return %arg0, %c0_i32 : i32, i32
  }
  func.func @transform_2(%arg0: i32) -> (i32, i32) {
    %c0_i32 = arith.constant 0 : i32
    %c0_i32_0 = arith.constant 0 : i32
    return %arg0, %c0_i32 : i32, i32
  }
  func.func @transform_3(%arg0: i32) -> (i32, i32) {
    %c0_i32 = arith.constant 0 : i32
    %c0_i32_0 = arith.constant 0 : i32
    %c0_i32_1 = arith.constant 0 : i32
    return %c0_i32, %c0_i32_0 : i32, i32
  }
  func.func @transform_4(%arg0: i32) -> (i32, i32) {
    %c0_i32 = arith.constant 0 : i32
    %c0_i32_0 = arith.constant 0 : i32
    %c0_i32_1 = arith.constant 0 : i32
    return %c0_i32, %c0_i32_0 : i32, i32
  }
  func.func @transform_5(%arg0: i32) -> (i32, i32) {
    %c0_i32 = arith.constant 0 : i32
    %c0_i32_0 = arith.constant 0 : i32
    return %arg0, %c0_i32 : i32, i32
  }
  func.func @transform_6(%arg0: i32) -> (i32, i32) {
    %c0_i32 = arith.constant 0 : i32
    %c0_i32_0 = arith.constant 0 : i32
    return %arg0, %c0_i32 : i32, i32
  }
}

</mosaic_0001>

<bundles_post_ra>
// kernel: tpu_custom_call.1
= control target key start
LH: loop header
LB: loop body
LE: loop exit
PB: predicated region body
PF: predicated region fallthrough
CT: control target
= control target key end

     0   :  { %12 = vsyncpa [#allocation3], 0  ;;  %s3455_s0 = inlined_call_operand.vmem [shape: f32[16,32], index: 0, kind: input, shape index: {}]   ;;  %s3456_s1 = inlined_call_operand.vmem [shape: f32[16,32], index: 1, kind: input, shape index: {}]   ;;  %s3457_s2 = inlined_call_operand.vmem [shape: f32[16,256], index: 2, kind: input, shape index: {}]   ;;  %s3458_s3 = inlined_call_operand.vmem [shape: f32[32,256], index: 3, kind: input, shape index: {}]   ;;  %s3459_s4 = inlined_call_operand.vmem [shape: f32[256,8], index: 4, kind: input, shape index: {}]   ;;  %s3460_s5 = inlined_call_operand.hbm [shape: f32[16,256], index: 5, kind: output, shape index: {0}]   ;;  %s3461_s6 = inlined_call_operand.vmem [shape: f32[16,8], index: 6, kind: output, shape index: {1}]  }
   0x1   :  { %14 = vsyncpa [#allocation3 + $0x1], 0  ;;  %s2587_s21 = smov 0   ;;  %s2589_s22 = smov 0  }
   0x2   :  { %s2591_s23 = smov 0   ;;  %s2593_s24 = smov 0  }
   0x3 LB: > { %s2608_s25 = sadd.s32 4294967295, %s2548_s24   ;;  %s1952_s26 = sadd.s32 4294967294, %s2548_s24   ;;  %s2548_s24 = sphi %s2593_s24, %s3678_s24   ;;  %s2544_s23 = sphi %s2591_s23, %s3677_s23   ;;  %s2540_s22 = sphi %s2589_s22, %s3676_s22   ;;  %s2536_s21 = sphi %s2587_s21, %s3675_s21  }
   0x4   : > { %s2612_s27 = sadd.s32 1, %s2548_s24   ;;  %s147_s28 = sadd.s32 1, %s2544_s23 }
   0x5   : > { %s144_s29 = ssub.s32 %s2548_s24, %s2612_s27  ;;  %p157_p0 = scmp.ne.s32.totalorder %s2544_s23, %s2540_s22 }
   0x6   : > { %p145_p1 = scmp.eq.s32.totalorder %s144_s29, 0  ;;  %p158_p2 = scmp.eq.s32.totalorder %s2608_s25, 1 }
   0x7   : > { %p163_p3 = scmp.ne.s32.totalorder %s2540_s22, %s2536_s21  ;;  %p164_p4 = scmp.eq.s32.totalorder %s1952_s26, 1 }
   0x8   : > { %s2623_s30 = scalar_select %p145_p1, %s2544_s23, %s147_s28  }
   0x9   : > { %p2625_p5 = por %p158_p2, %p157_p0  ;;  %p2629_p6 = por %p164_p4, %p163_p3 }
   0xa   : > { %p1955_p7 = scmp.ge.s32.totalorder %s2548_s24, 1  ;;  %p236_p8 = scmp.lt.s32.totalorder %s2548_s24, 3 }
   0xc   : > { %p237_p9 = pnand %p1955_p7, %p236_p8 }
   0xe   : > { %240 = sbr.rel (%p237_p9) target bundleno = 407 (0x197), region = 40 }
  0x15   : > { %v934_v0 = vld [vmem:[%s3459_s4 + $0x80] sm:$0xff]  ;;  %v935_v1 = vld [vmem:[%s3459_s4 + $0x88] sm:$0xff]  ;;  %v936_v7 = vld [vmem:[%s3459_s4 + $0x90] sm:$0xff]  ;;  %v3462_v9 = vmov 0.0   ;;  %p278_p10 = scmp.lt.s32.totalorder %s2608_s25, 1  ;;  %vm311_vm0 = vcmask 261120  }
  0x16   : > { %v918_v2 = vld [vmem:[%s3459_s4] sm:$0xff]  ;;  %v999_v3 = vand.u32 4294901760, %v934_v0  ;;  %v1002_v4 = vand.u32 4294901760, %v935_v1  ;;  %v919_v5 = vld [vmem:[%s3459_s4 + $0x8] sm:$0xff]  ;;  %v937_v8 = vld [vmem:[%s3459_s4 + $0x98] sm:$0xff]  ;;  %390 = vmatprep.mubr.f32.mxu0 %v3462_v9  ;;  %v1005_v11 = vand.u32 4294901760, %v936_v7 }
  0x17   : > { %v951_v6 = vand.u32 4294901760, %v918_v2  ;;  %v954_v10 = vand.u32 4294901760, %v919_v5  ;;  %v1008_v12 = vand.u32 4294901760, %v937_v8  ;;  %v920_v13 = vld [vmem:[%s3459_s4 + $0x10] sm:$0xff]  ;;  %v921_v14 = vld [vmem:[%s3459_s4 + $0x18] sm:$0xff]  ;;  %v938_v15 = vld [vmem:[%s3459_s4 + $0xa0] sm:$0xff] }
  0x18   : > { %v2663_v16 = vpack.c.bf16 %v1002_v4, %v999_v3  ;;  %v939_v17 = vld [vmem:[%s3459_s4 + $0xa8] sm:$0xff]  ;;  %v922_v18 = vld [vmem:[%s3459_s4 + $0x20] sm:$0xff]  ;;  %v2674_v20 = vsub.f32 %v934_v0, %v999_v3  ;;  %v940_v23 = vld [vmem:[%s3459_s4 + $0xb0] sm:$0xff]  ;;  %v2684_v24 = vsub.f32 %v935_v1, %v1002_v4  ;;  %v957_v25 = vand.u32 4294901760, %v920_v13  ;;  %s2753_s12 = scalar_select %p278_p10, %s2608_s25, 1 }
  0x19   : > { %v923_v19 = vld [vmem:[%s3459_s4 + $0x28] sm:$0xff]  ;;  %v2676_v21 = vpack.c.bf16 %v954_v10, %v951_v6  ;;  %v2678_v22 = vpack.c.bf16 %v1008_v12, %v1005_v11  ;;  %v960_v26 = vand.u32 4294901760, %v921_v14  ;;  %v1011_v27 = vand.u32 4294901760, %v938_v15  ;;  %v941_v32 = vld [vmem:[%s3459_s4 + $0xb8] sm:$0xff]  ;;  %v924_v33 = vld [vmem:[%s3459_s4 + $0x30] sm:$0xff]  ;;  %s269_s15 = sand.u32 1, %s2540_s22  }
  0x1a   : > { %3559 = vst [vmem:[#allocation5_spill] sm:$0xff] %v2663_v16  ;;  %3560 = vst [vmem:[#allocation6_spill] sm:$0xff] %v2674_v20  ;;  %2229 = vmatprep.subr.bf16.mxu1 %v2663_v16  ;;  %v2687_v28 = vsub.f32 %v918_v2, %v951_v6  ;;  %v1014_v29 = vand.u32 4294901760, %v939_v17  ;;  %v963_v30 = vand.u32 4294901760, %v922_v18  ;;  %v966_v31 = vand.u32 4294901760, %v923_v19  ;;  %v925_v38 = vld [vmem:[%s3459_s4 + $0x38] sm:$0xff] }
  0x1b   : > { %3561 = vst [vmem:[#allocation7_spill] sm:$0xff] %v2676_v21  ;;  %3562 = vst [vmem:[#allocation8_spill] sm:$0xff] %v2678_v22  ;;  %2231 = vmatpush3.bf16.msra.mxu1 %v2676_v21  ;;  %v2695_v34 = vsub.f32 %v919_v5, %v954_v10  ;;  %v2698_v35 = vsub.f32 %v936_v7, %v1005_v11  ;;  %v2700_v36 = vpack.c.bf16 %v960_v26, %v957_v25  ;;  %v942_v39 = vld [vmem:[%s3459_s4 + $0xc0] sm:$0xff]  ;;  %v943_v40 = vld [vmem:[%s3459_s4 + $0xc8] sm:$0xff]  ;;  %s2793_s29 = sshll.u32 %s2753_s12, 3  ;;  %s1968_s18 = sshll.u32 %s2753_s12, 4 }
  0x1c   : > { %2233 = vmatprep.subr.bf16.mxu1 %v2678_v22  ;;  %v1017_v37 = vand.u32 4294901760, %v940_v23  ;;  %v2712_v41 = vsub.f32 %v937_v8, %v1008_v12  ;;  %v2714_v42 = vsub.f32 %v920_v13, %v957_v25  ;;  %v2716_v43 = vsub.f32 %v921_v14, %v960_v26  ;;  %v926_v45 = vld [vmem:[%s3459_s4 + $0x40] sm:$0xff]  ;;  %v927_v46 = vld [vmem:[%s3459_s4 + $0x48] sm:$0xff]  ;;  %v306_v60 = vld [vmem:[%s3458_s3 + $0x18] sm:$0xff]  ;;  %s285_s28 = scalar_lea.vmem %s3456_s1, %s2793_s29  ;;  %s290_s10 = scalar_lea.vmem %s3457_s2, %s1968_s18 }
  0x1d   : > { %3563 = vst [vmem:[#allocation9_spill] sm:$0xff] %v2700_v36  ;;  %v2718_v44 = vpack.c.bf16 %v1014_v29, %v1011_v27  ;;  %v2726_v47 = vsub.f32 %v938_v15, %v1011_v27  ;;  %v2728_v48 = vsub.f32 %v939_v17, %v1014_v29  ;;  %v1020_v49 = vand.u32 4294901760, %v941_v32  ;;  %v304_v55 = vld [vmem:[%s3458_s3 + $0x8] sm:$0xff]  ;;  %v303_v61 = vld [vmem:[%s3458_s3] sm:$0xff]  ;;  %v305_v62 = vld [vmem:[%s3458_s3 + $0x10] sm:$0xff]  ;;  %s281_s14 = scalar_lea.vmem %s3455_s0, %s2793_s29  ;;  %s1956_s16 = sshll.u32 %s269_s15, 4 }
  0x1e   : > { %v969_v50 = vand.u32 4294901760, %v924_v33  ;;  %v2731_v51 = vpack.c.bf16 %v966_v31, %v963_v30  ;;  %v972_v52 = vand.u32 4294901760, %v925_v38  ;;  %v1023_v53 = vand.u32 4294901760, %v942_v39  ;;  %v944_v3 = vld [vmem:[%s3459_s4 + $0xd0] sm:$0xff]  ;;  %v945_v4 = vld [vmem:[%s3459_s4 + $0xd8] sm:$0xff]  ;;  %v308_v25 = vld [vmem:[%s3458_s3 + $0x28] sm:$0xff] }
  0x1f   : > { %3564 = vst [vmem:[#allocation10_spill] sm:$0xff] %v2718_v44  ;;  %2235 = vmatpush3.bf16.msra.mxu1 %v2700_v36  ;;  %v1026_v54 = vand.u32 4294901760, %v943_v40  ;;  %v2737_v56 = vsub.f32 %v922_v18, %v963_v30  ;;  %v2739_v57 = vpack.c.bf16 %v1020_v49, %v1017_v37  ;;  %v975_v58 = vand.u32 4294901760, %v926_v45  ;;  %v928_v10 = vld [vmem:[%s3459_s4 + $0x50] sm:$0xff]  ;;  %v929_v11 = vld [vmem:[%s3459_s4 + $0x58] sm:$0xff]  ;;  %s1969_s17 = sshll.u32 %s2608_s25, 8 }
  0x20   : > { %3565 = vst [vmem:[#allocation11_spill] sm:$0xff] %v2731_v51  ;;  %2237 = vmatprep.subr.bf16.mxu1 %v2718_v44  ;;  %v978_v59 = vand.u32 4294901760, %v927_v46  ;;  %v2755_v63 = vsub.f32 %v923_v19, %v966_v31  ;;  %v2757_v0 = vsub.f32 %v940_v23, %v1017_v37  ;;  %v2759_v1 = vsub.f32 %v941_v32, %v1020_v49  ;;  %v310_v31 = vld [vmem:[%s3458_s3 + $0x38] sm:$0xff]  ;;  %v307_v32 = vld [vmem:[%s3458_s3 + $0x20] sm:$0xff]  ;;  %s271_s18 = scalar_lea.vmem [#allocation2], %s1956_s16  ;;  %s3409_s26 = scalar_lea.hbm %s3460_s5, %s1969_s17 }
  0x21   : > { %3566 = vst [vmem:[#allocation12_spill] sm:$0xff] %v2737_v56  ;;  %3567 = vst [vmem:[#allocation13_spill] sm:$0xff] %v2739_v57  ;;  %v2761_v2 = vsub.f32 %v924_v33, %v969_v50  ;;  %v2769_v5 = vpack.c.bf16 %v972_v52, %v969_v50  ;;  %v2771_v6 = vsub.f32 %v925_v38, %v972_v52  ;;  %v318_v12 = vand.u32 4294901760, %v304_v55  ;;  %v309_v33 = vld [vmem:[%s3458_s3 + $0x30] sm:$0xff]  ;;  %v946_v49 = vld [vmem:[%s3459_s4 + $0xe0] sm:$0xff]  ;;  %s1842_s19 = sshll.u32 %s271_s18, 4  ;;  %s3411_s19 = int_to_ptr.vmem [resolvable:$true] %s1842_s19 }
  0x22   : > { %v2773_v7 = vpack.c.bf16 %v1026_v54, %v1023_v53  ;;  %v2775_v8 = vsub.f32 %v942_v39, %v1023_v53  ;;  %v322_v13 = vand.u32 4294901760, %v306_v60  ;;  %v320_v14 = vand.u32 4294901760, %v303_v61  ;;  %v947_v50 = vld [vmem:[%s3459_s4 + $0xe8] sm:$0xff]  ;;  %s2486_s25 = scalar_lea.vmem %s3411_s19, 256  ;;  %s2551_s9 = smov [#allocation2]  }
  0x23   : > { %3568 = vst [vmem:[#allocation14_spill] sm:$0xff] %v2769_v5  ;;  %2239 = vmatpush3.bf16.msra.mxu1 %v2731_v51  ;;  %v324_v15 = vand.u32 4294901760, %v305_v62  ;;  %v2785_v17 = vsub.f32 %v943_v40, %v1026_v54  ;;  %v2787_v18 = vpack.c.bf16 %v978_v59, %v975_v58  ;;  %v1029_v19 = vand.u32 4294901760, %v944_v3  ;;  %p2487_p11 = scmp.ne.s32.totalorder %s3411_s19, %s2486_s25 }
  0x24   : > { %3569 = vst [vmem:[#allocation15_spill] sm:$0xff] %v2773_v7  ;;  %2241 = vmatprep.subr.bf16.mxu1 %v2739_v57  ;;  %v1032_v23 = vand.u32 4294901760, %v945_v4  ;;  %v2795_v26 = vpack.c.bf16 %v322_v13, %v318_v12  ;;  %v981_v29 = vand.u32 4294901760, %v928_v10  ;;  %v984_v30 = vand.u32 4294901760, %v929_v11 }
  0x25   : > { %3570 = vst [vmem:[#allocation16_spill] sm:$0xff] %v2787_v18  ;;  %v2797_v27 = vpack.c.bf16 %v324_v15, %v320_v14  ;;  %v2808_v37 = vsub.f32 %v926_v45, %v975_v58  ;;  %v2810_v38 = vsub.f32 %v927_v46, %v978_v59  ;;  %v2812_v39 = vsub.f32 %v304_v55, %v318_v12  ;;  %p2488_p12 = pnand %p2487_p11, %p2625_p5 }
  0x26   : > { %v2814_v40 = vsub.f32 %v306_v60, %v322_v13  ;;  %2181 = vmatprep.subr.bf16.mxu0 %v2795_v26  ;;  %v2824_v45 = vsub.f32 %v303_v61, %v320_v14  ;;  %v2826_v46 = vsub.f32 %v305_v62, %v324_v15  ;;  %v2828_v52 = vpack.c.bf16 %v1032_v23, %v1029_v19  ;;  %v930_v60 = vld [vmem:[%s3459_s4 + $0x60] sm:$0xff]  ;;  %v931_v14 = vld [vmem:[%s3459_s4 + $0x68] sm:$0xff] }
  0x27   : > { %3571 = vst [vmem:[#allocation17_spill] sm:$0xff] %v2797_v27  ;;  %2243 = vmatpush3.bf16.msra.mxu1 %v2769_v5  ;;  %v326_v53 = vand.u32 4294901760, %v308_v25  ;;  %2183 = vmatpush1.bf16.msra.mxu0 %v2797_v27  ;;  %v2836_v54 = vsub.f32 %v944_v3, %v1029_v19  ;;  %v330_v55 = vand.u32 4294901760, %v310_v31  ;;  %v328_v58 = vand.u32 4294901760, %v307_v32  ;;  %p2489_p13 = pneg %p2488_p12 }
  0x28   : > { %3572 = vst [vmem:[#allocation18_spill] sm:$0xff] %v2828_v52  ;;  %2245 = vmatprep.subr.bf16.mxu1 %v2773_v7  ;;  %v332_v59 = vand.u32 4294901760, %v309_v33  ;;  %v2841_v61 = vsub.f32 %v945_v4, %v1032_v23  ;;  %v2843_v62 = vpack.c.bf16 %v984_v30, %v981_v29  ;;  %v1035_v12 = vand.u32 4294901760, %v946_v49  ;;  %v295_v7 = vld [vmem:[%s285_s28] sm:$0xff]  ;;  %v948_v4 = vld [vmem:[%s3459_s4 + $0xf0] sm:$0xff]  ;;  %s1824_s28 = scalar_lea.sflag [#allocation3], %s269_s15 }
  0x29   : > { %v1038_v13 = vand.u32 4294901760, %v947_v50  ;;  %v2848_v15 = vsub.f32 %v928_v10, %v981_v29  ;;  %v2850_v3 = vsub.f32 %v929_v11, %v984_v30  ;;  %v2852_v19 = vpack.c.bf16 %v330_v55, %v326_v53 }
  0x2a   : > { %3573 = vst [vmem:[#allocation19_spill] sm:$0xff] %v2843_v62  ;;  %v2854_v9 = vpack.c.bf16 %v332_v59, %v328_v58  ;;  %v2860_v23 = vsub.f32 %v308_v25, %v326_v53  ;;  %v2862_v5 = vsub.f32 %v310_v31, %v330_v55  ;;  %v2864_v10 = vsub.f32 %v307_v32, %v328_v58  ;;  %v2875_v25 = vld [vmem:[%s3459_s4 + $0xf8] sm:$0xff]  ;;  %v2886_v58 = vld [vmem:[%s3459_s4 + $0x70] sm:$0xff] }
  0x2b   : > { %3574 = vst [vmem:[#allocation20_spill] sm:$0xff] %v2852_v19  ;;  %2247 = vmatpush3.bf16.msra.mxu1 %v2787_v18  ;;  %v987_v11 = vand.u32 4294901760, %v930_v60  ;;  %2185 = vmatprep.subr.bf16.mxu0 %v2852_v19  ;;  %v2868_v29 = vpack.c.bf16 %v1038_v13, %v1035_v12  ;;  %v990_v30 = vand.u32 4294901760, %v931_v14  ;;  %v2879_v31 = vadd.f32 1e-05, %v295_v7 }
  0x2c   : > { %3575 = vst [vmem:[#allocation21_spill] sm:$0xff] %v2854_v9  ;;  %2249 = vmatprep.subr.bf16.mxu1 %v2828_v52  ;;  %2187 = vmatpush1.bf16.msra.mxu0 %v2854_v9  ;;  %v1041_v55 = vand.u32 4294901760, %v948_v4  ;;  %v2888_v51 = vsub.f32 %v309_v33, %v332_v59  ;;  %v2890_v57 = vsub.f32 %v946_v49, %v1035_v12  ;;  %v3578_v52 = vand.u32 4294901760, %v2812_v39 }
  0x2d   : > { %3576 = vst [vmem:[#allocation22_spill] sm:$0xff] %v2868_v29  ;;  %3577 = vst [vmem:[#allocation23_spill] sm:$0xff] %v2879_v31  ;;  %v3579_v7 = vand.u32 4294901760, %v2814_v40  ;;  %v2899_v53 = vpack.c.bf16 %v990_v30, %v987_v11  ;;  %2480 = vrcp.f32 %v2879_v31  ;;  %v3581_v44 = vand.u32 4294901760, %v2824_v45 }
  0x2e   : > { %v416_v18 = vsub.f32 %v2812_v39, %v3578_v52  ;;  %v2909_v52 = vld [vmem:[%s3459_s4 + $0x78] sm:$0xff]  ;;  %v2919_v49 = vsub.f32 %v947_v50, %v1038_v13  ;;  %v2921_v36 = vsub.f32 %v930_v60, %v987_v11  ;;  %v2923_v22 = vsub.f32 %v931_v14, %v990_v30 }
  0x2f   : > { %v428_v32 = vsub.f32 %v2814_v40, %v3579_v7  ;;  %2251 = vmatpush3.bf16.msra.mxu1 %v2843_v62  ;;  %3580 = vst [vmem:[#allocation24_spill] sm:$0xff] %v2899_v53  ;;  %v422_v33 = vsub.f32 %v2824_v45, %v3581_v44  ;;  %v3582_v7 = vand.u32 4294901760, %v2826_v46  ;;  %v3583_v21 = vand.u32 4294901760, %v2875_v25  ;;  %v2933_v44 = vld [vmem:[%s290_s10 + $0x8] sm:$0xff] }
  0x30   : > { %2253 = vmatprep.subr.bf16.mxu1 %v2868_v29  ;;  %v417_v59 = vand.u32 4294901760, %v416_v18  ;;  %v3491_v29 = vand.u32 4294901760, %v2909_v52  ;;  %3585 = vst [vmem:[#allocation26_spill] sm:$0xff] %v2933_v44  ;;  %v3492_v60 = vand.u32 4294901760, %v2862_v5  ;;  %2482 = vrsqrt.f32 %v2879_v31 }
  0x31   : > { %v429_v12 = vand.u32 4294901760, %v428_v32  ;;  %v434_v62 = vsub.f32 %v2826_v46, %v3582_v7  ;;  %v2927_v16 = vpack.c.bf16 %v3583_v21, %v1041_v55  ;;  %v2929_v32 = vsub.f32 %v948_v4, %v1041_v55  ;;  %v2939_v21 = vld [vmem:[%s290_s10] sm:$0xff]  ;;  %s2490_s10 = sshll.u32 %s2551_s9, 4  ;;  %s2491_s10 = int_to_ptr.vmem [resolvable:$false] %s2490_s10 }
  0x32   : > { %v3490_v7 = vand.u32 4294901760, %v2860_v23  ;;  %v423_v50 = vand.u32 4294901760, %v422_v33  ;;  %v3495_v13 = vand.u32 4294901760, %v2864_v10  ;;  %3586 = vst [vmem:[#allocation27_spill] sm:$0xff] %v2939_v21  ;;  %v3587_v4 = vand.u32 4294901760, %v2886_v58  ;;  %s2492_s11 = scalar_lea.vmem %s2491_s10, 512  ;;  %p2493_p0 = scmp.lt.s32.totalorder %s3411_s19, %s2491_s10 }
  0x33   : > { %3584 = vst [vmem:[#allocation25_spill] sm:$0xff] %v2927_v16  ;;  %v2188_v18 = vpack.c.bf16 %v429_v12, %v417_v59  ;;  %2255 = vmatpush3.bf16.msra.mxu1 %v2899_v53  ;;  %v435_v14 = vand.u32 4294901760, %v434_v62  ;;  %v3499_v55 = vand.u32 4294901760, %v2888_v51  ;;  %v452_v33 = vsub.f32 %v2862_v5, %v3492_v60  ;;  %v298_v60 = vld [vmem:[%s281_s14] sm:$0xff]  ;;  %p2494_p1 = scmp.lt.s32.totalorder %s2492_s11, %s2486_s25 }
  0x34   : > { %2257 = vmatprep.subr.bf16.mxu1 %v2927_v16  ;;  %v2950_v11 = vpack.c.bf16 %v3491_v29, %v3587_v4  ;;  %v440_v30 = vsub.f32 %v2860_v23, %v3490_v7  ;;  %v446_v62 = vsub.f32 %v2864_v10, %v3495_v13  ;;  %v917_v59 = vmul.f32 %v2933_v44, %v2933_v44 }
  0x35   : > { %2189 = vmatprep.subr.bf16.mxu0 %v2188_v18  ;;  %v3510_v12 = vand.u32 4294901760, %v2674_v20  ;;  %v458_v4 = vsub.f32 %v2888_v51, %v3499_v55  ;;  %v3513_v7 = vand.u32 4294901760, %v2684_v24  ;;  %v916_v29 = vmul.f32 %v2939_v21, %v2939_v21  ;;  %p2495_p2 = por %p2494_p1, %p2493_p0 }
  0x36   : > { %3588 = vst [vmem:[#allocation28_spill] sm:$0xff] %v2950_v11  ;;  %v441_v18 = vand.u32 4294901760, %v440_v30  ;;  %v453_v16 = vand.u32 4294901760, %v452_v33  ;;  %v447_v13 = vand.u32 4294901760, %v446_v62  ;;  %v2972_v53 = vand.u32 4294901760, %v917_v59 }
  0x37   : > { %2259 = vmatpush3.bf16.msra.mxu1 %v2950_v11  ;;  %v1178_v30 = vsub.f32 %v2674_v20, %v3510_v12  ;;  %v459_v44 = vand.u32 4294901760, %v458_v4  ;;  %v1185_v55 = vsub.f32 %v2684_v24, %v3513_v7  ;;  %v2980_v31 = vand.u32 4294901760, %v916_v29  ;;  %v2481_v9 = vpop.eup %2480  ;;  %p2496_p3 = pnand %p2495_p2, %p2489_p13 }
  0x38   : > { %3589 = vst [vmem:[#allocation29_spill] sm:$0xff] %v2972_v53  ;;  %v2983_v19 = vpack.c.bf16 %v435_v14, %v423_v50  ;;  %v2986_v33 = vsub.f32 %v917_v59, %v2972_v53  ;;  %v3514_v11 = vand.u32 4294901760, %v2695_v34  ;;  %v299_v27 = vmul.f32 %v2481_v9, %v298_v60 }
  0x39   : > { %3590 = vst [vmem:[#allocation30_spill] sm:$0xff] %v2980_v31  ;;  %v1179_v62 = vand.u32 4294901760, %v1178_v30  ;;  %v2989_v12 = vpack.c.bf16 %v453_v16, %v441_v18  ;;  %v1186_v4 = vand.u32 4294901760, %v1185_v55  ;;  %v2992_v20 = vsub.f32 %v916_v29, %v2980_v31 }
  0x3a   : > { %3591 = vst [vmem:[#allocation31_spill] sm:$0xff] %v2986_v33  ;;  %v2994_v7 = vpack.c.bf16 %v459_v44, %v447_v13  ;;  %v3517_v21 = vand.u32 4294901760, %v2986_v33  ;;  %v3593_v50 = vand.u32 4294901760, %v2687_v28  ;;  %v1073_v59 = vsub.f32 %v2695_v34, %v3514_v11  ;;  %v2483_v44 = vpop.eup %2482 }
  0x3b   : > { %3592 = vst [vmem:[#allocation32_spill] sm:$0xff] %v2992_v20  ;;  %v313_v9 = vsel %vm311_vm0, %v299_v27, 0  ;;  %v2260_v16 = vpack.c.bf16 %v1186_v4, %v1179_v62  ;;  %v3518_v60 = vand.u32 4294901760, %v2992_v20  ;;  %v3520_v62 = vand.u32 4294901760, %v2698_v35 }
  0x3c   : > { %v1066_v14 = vsub.f32 %v2687_v28, %v3593_v50  ;;  %v3007_v13 = vand.u32 4294901760, %v313_v9  ;;  %v1049_v55 = vsub.f32 %v2986_v33, %v3517_v21  ;;  %v1074_v30 = vand.u32 4294901760, %v1073_v59 }
  0x3d   : > { %v316_v50 = vsel %vm311_vm0, %v2483_v44, 0  ;;  %2261 = vmatprep.subr.bf16.mxu1 %v2260_v16  ;;  %v1055_v27 = vsub.f32 %v2992_v20, %v3518_v60  ;;  %v3519_v4 = vand.u32 4294901760, %v2712_v41  ;;  %v1192_v59 = vsub.f32 %v2698_v35, %v3520_v62 }
  0x3e   : > { %v1067_v18 = vand.u32 4294901760, %v1066_v14  ;;  %v3019_v11 = vsub.f32 %v313_v9, %v3007_v13  ;;  %v3021_v29 = vand.u32 4294901760, %v316_v50  ;;  %v1050_v31 = vand.u32 4294901760, %v1049_v55 }
  0x3f   : > { %v1056_v14 = vand.u32 4294901760, %v1055_v27  ;;  %v1199_v16 = vsub.f32 %v2712_v41, %v3519_v4  ;;  %v3521_v44 = vand.u32 4294901760, %v2714_v42  ;;  %v3532_v55 = vand.u32 4294901760, %v2728_v48 }
  0x40   : > { %3594 = vst [vmem:[#allocation33_spill] sm:$0xff] %v3021_v29  ;;  %v2262_v21 = vpack.c.bf16 %v1074_v30, %v1067_v18  ;;  %v3524_v60 = vand.u32 4294901760, %v3019_v11  ;;  %v3032_v9 = vsub.f32 %v316_v50, %v3021_v29  ;;  %1051 = vmatprep.mubr.f32.mxu1 %v1050_v31  ;;  %v3525_v18 = vand.u32 4294901760, %v2716_v43 }
  0x41   : > { %1057 = vmatmul.mubr.f32.vlgmr.msra.gmra.mrb[0].mxu1 %v1056_v14  ;;  %v1193_v30 = vand.u32 4294901760, %v1192_v59  ;;  %v1200_v27 = vand.u32 4294901760, %v1199_v16  ;;  %v1080_v4 = vsub.f32 %v2714_v42, %v3521_v44  ;;  %v3531_v59 = vand.u32 4294901760, %v2726_v47 }
  0x42   : > { %v394_v50 = vsub.f32 %v3019_v11, %v3524_v60  ;;  %v3526_v31 = vand.u32 4294901760, %v3032_v9  ;;  %2263 = vmatpush3.bf16.msra.mxu1 %v2262_v21  ;;  %v1087_v14 = vsub.f32 %v2716_v43, %v3525_v18  ;;  %1287 = vmatprep.mubr.f32.mxu1 %v2972_v53  ;;  %v3533_v62 = vand.u32 4294901760, %v2737_v56 }
  0x43   : > { %v2264_v16 = vpack.c.bf16 %v1200_v27, %v1193_v30  ;;  %v1081_v44 = vand.u32 4294901760, %v1080_v4  ;;  %v1206_v18 = vsub.f32 %v2726_v47, %v3531_v59  ;;  %v1213_v30 = vsub.f32 %v2728_v48, %v3532_v55 }
  0x44   : > { %v395_v20 = vand.u32 4294901760, %v394_v50  ;;  %v405_v60 = vsub.f32 %v3032_v9, %v3526_v31  ;;  %v1088_v21 = vand.u32 4294901760, %v1087_v14  ;;  %v1094_v4 = vsub.f32 %v2737_v56, %v3533_v62 }
  0x45   : > { %2265 = vmatprep.subr.bf16.mxu1 %v2264_v16  ;;  %v3553_v27 = vand.u32 4294901760, %v2755_v63  ;;  %v3536_v50 = vand.u32 4294901760, %v2757_v0  ;;  %v1207_v53 = vand.u32 4294901760, %v1206_v18  ;;  %v3537_v33 = vand.u32 4294901760, %v2759_v1 }
  0x46   : > { %396 = vmatmul.mubr.f32.vlgmr.msra.gmra.mrb[0].mxu0 %v395_v20  ;;  %v406_v31 = vand.u32 4294901760, %v405_v60  ;;  %v2266_v14 = vpack.c.bf16 %v1088_v21, %v1081_v44  ;;  %v3595_v16 = vmov 0.0   ;;  %v1214_v59 = vand.u32 4294901760, %v1213_v30 }
  0x47   : > { %2191 = vmatpush1.bf16.msra.mxu0 %v2983_v19  ;;  %401 = vmatprep.mubr.f32.mxu0 %v3595_v16  ;;  %v1095_v55 = vand.u32 4294901760, %v1094_v4  ;;  %v1101_v62 = vsub.f32 %v2755_v63, %v3553_v27  ;;  %v1220_v56 = vsub.f32 %v2757_v0, %v3536_v50  ;;  %v1227_v20 = vsub.f32 %v2759_v1, %v3537_v33 }
  0x48   : > { %2193 = vmatprep.subr.bf16.mxu0 %v2989_v12  ;;  %2267 = vmatpush3.bf16.msra.mxu1 %v2266_v14  ;;  %v3540_v19 = vand.u32 4294901760, %v2761_v2  ;;  %v3539_v60 = vand.u32 4294901760, %v2771_v6  ;;  %v3538_v44 = vand.u32 4294901760, %v2775_v8  ;;  %v2268_v18 = vpack.c.bf16 %v1214_v59, %v1207_v53 }
  0x49   : > { %v1102_v21 = vand.u32 4294901760, %v1101_v62  ;;  %v1221_v30 = vand.u32 4294901760, %v1220_v56  ;;  %v3541_v4 = vand.u32 4294901760, %v2785_v17  ;;  %v1228_v50 = vand.u32 4294901760, %v1227_v20 }
  0x4a   : > { %407 = vmatmul.mubr.f32.gmra.mrb[2].mxu0 %v406_v31  ;;  %v1108_v12 = vsub.f32 %v2761_v2, %v3540_v19  ;;  %v1115_v14 = vsub.f32 %v2771_v6, %v3539_v60  ;;  %v1234_v33 = vsub.f32 %v2775_v8, %v3538_v44  ;;  %v3551_v62 = vand.u32 4294901760, %v2808_v37  ;;  %2269 = vmatprep.subr.bf16.mxu1 %v2268_v18 }
  0x4b   : > { %2195 = vmatpush1.bf16.msra.mxu0 %v2994_v7  ;;  %517 = vmatprep.mubr.f32.mxu0 %v3595_v16  ;;  %v2270_v56 = vpack.c.bf16 %v1102_v21, %v1095_v55  ;;  %v1241_v53 = vsub.f32 %v2785_v17, %v3541_v4  ;;  %v3550_v31 = vand.u32 4294901760, %v2810_v38  ;;  %v3596_v59 = vpack.c.bf16 %v2814_v40, %v2812_v39 }
  0x4c   : > { %v2272_v20 = vpack.c.bf16 %v1228_v50, %v1221_v30  ;;  %v1109_v44 = vand.u32 4294901760, %v1108_v12  ;;  %v1116_v60 = vand.u32 4294901760, %v1115_v14  ;;  %v1235_v7 = vand.u32 4294901760, %v1234_v33 }
  0x4d   : > { %2197 = vmatprep.subr.bf16.mxu0 %v3596_v59  ;;  %v3597_v19 = vand.u32 4294901760, %v2875_v25  ;;  %2271 = vmatpush3.bf16.msra.mxu1 %v2270_v56  ;;  %v1242_v21 = vand.u32 4294901760, %v1241_v53  ;;  %v1122_v4 = vsub.f32 %v2808_v37, %v3551_v62  ;;  %v1129_v59 = vsub.f32 %v2810_v38, %v3550_v31  ;;  %v3604_v62 = vld [vmem:[#allocation20_spill] sm:$0xff] }
  0x4e   : > { %519 = vmatmul.mubr.f32.vlgmr.msra.gmra.mrb[0].mxu0 %v3007_v13  ;;  %v2202_v33 = vpack.c.bf16 %v2888_v51, %v2864_v10  ;;  %2273 = vmatprep.subr.bf16.mxu1 %v2272_v20  ;;  %v2274_v50 = vpack.c.bf16 %v1116_v60, %v1109_v44  ;;  %v3599_v18 = vpack.c.bf16 %v2826_v46, %v2824_v45  ;;  %v3546_v56 = vand.u32 4294901760, %v2848_v15 }
  0x4f   : > { %v3106_v55 = vsub.f32 %v2875_v25, %v3597_v19  ;;  %v3543_v25 = vand.u32 4294901760, %v2836_v54  ;;  %v3542_v19 = vand.u32 4294901760, %v2841_v61  ;;  %524 = vmatprep.mubr.f32.mxu0 %v3595_v16  ;;  %v2276_v30 = vpack.c.bf16 %v1242_v21, %v1235_v7 }
  0x50   : > { %2199 = vmatpush1.bf16.msra.mxu0 %v3599_v18  ;;  %v1123_v12 = vand.u32 4294901760, %v1122_v4  ;;  %v1130_v14 = vand.u32 4294901760, %v1129_v59  ;;  %v3600_v53 = vand.u32 4294901760, %v2886_v58  ;;  %v3601_v60 = vpack.c.bf16 %v2862_v5, %v2860_v23 }
  0x51   : > { %3598 = vst [vmem:[#allocation34_spill] sm:$0xff] %v3106_v55  ;;  %v1248_v44 = vsub.f32 %v2836_v54, %v3543_v25  ;;  %v1255_v4 = vsub.f32 %v2841_v61, %v3542_v19  ;;  %v3545_v7 = vand.u32 4294901760, %v2850_v3  ;;  %v3602_v21 = vand.u32 4294901760, %v2909_v52  ;;  %2275 = vmatpush3.bf16.msra.mxu1 %v2274_v50 }
  0x52   : > { %v3127_v20 = vsub.f32 %v2886_v58, %v3600_v53  ;;  %2201 = vmatprep.subr.bf16.mxu0 %v3601_v60  ;;  %v2278_v58 = vpack.c.bf16 %v1130_v14, %v1123_v12  ;;  %v1136_v18 = vsub.f32 %v2848_v15, %v3546_v56  ;;  %v3544_v53 = vand.u32 4294901760, %v2890_v57  ;;  %526 = vmatmul.mubr.f32.gmra.mrb[2].mxu0 %v3021_v29 }
  0x53   : > { %v3142_v59 = vsub.f32 %v2909_v52, %v3602_v21  ;;  %2277 = vmatprep.subr.bf16.mxu1 %v2276_v30  ;;  %v1249_v60 = vand.u32 4294901760, %v1248_v44  ;;  %v1256_v19 = vand.u32 4294901760, %v1255_v4  ;;  %v1143_v25 = vsub.f32 %v2850_v3, %v3545_v7  ;;  %612 = vmatprep.mubr.f32.mxu0 %v3595_v16 }
  0x54   : > { %v3548_v52 = vand.u32 4294901760, %v2919_v49  ;;  %2203 = vmatpush1.bf16.msra.mxu0 %v2202_v33  ;;  %v1137_v50 = vand.u32 4294901760, %v1136_v18  ;;  %v1262_v12 = vsub.f32 %v2890_v57, %v3544_v53  ;;  %v3547_v14 = vand.u32 4294901760, %v2921_v36 }
  0x55   : > { %v3549_v30 = vand.u32 4294901760, %v2923_v22  ;;  %2205 = vmatprep.subr.bf16.mxu0 %v2795_v26  ;;  %v2280_v44 = vpack.c.bf16 %v1256_v19, %v1249_v60  ;;  %v1144_v4 = vand.u32 4294901760, %v1143_v25  ;;  %v3552_v33 = vand.u32 4294901760, %v2929_v32  ;;  %2279 = vmatpush3.bf16.msra.mxu1 %v2278_v58 }
  0x56   : > { %v1269_v21 = vsub.f32 %v2919_v49, %v3548_v52  ;;  %v1263_v18 = vand.u32 4294901760, %v1262_v12  ;;  %v1150_v53 = vsub.f32 %v2921_v36, %v3547_v14  ;;  %v1282_v56 = vand.u32 4294901760, %v3106_v55  ;;  %v3603_v12 = vld [vmem:[#allocation17_spill] sm:$0xff] }
  0x57   : > { %v1157_v7 = vsub.f32 %v2923_v22, %v3549_v30  ;;  %615 = vmatmul.mubr.f32.vlgmr.msra.gmra.mrb[0].mxu0 %v3019_v11  ;;  %2281 = vmatprep.subr.bf16.mxu1 %v2280_v44  ;;  %v2282_v25 = vpack.c.bf16 %v1144_v4, %v1137_v50  ;;  %v1276_v58 = vsub.f32 %v2929_v32, %v3552_v33  ;;  %v1163_v60 = vand.u32 4294901760, %v3127_v20 }
  0x58   : > { %v1270_v19 = vand.u32 4294901760, %v1269_v21  ;;  %2207 = vmatpush1.bf16.msra.mxu0 %v3603_v12  ;;  %620 = vmatprep.mubr.f32.mxu0 %v3595_v16  ;;  %v1151_v14 = vand.u32 4294901760, %v1150_v53  ;;  %v1283_v30 = vsub.f32 %v3106_v55, %v1282_v56  ;;  %v1170_v31 = vand.u32 4294901760, %v3142_v59  ;;  %v3607_v55 = vld [vmem:[#allocation21_spill] sm:$0xff] }
  0x59   : > { %v1158_v52 = vand.u32 4294901760, %v1157_v7  ;;  %2209 = vmatprep.subr.bf16.mxu0 %v3604_v62  ;;  %v3605_v50 = vand.u32 4294901760, %v2812_v39  ;;  %v3606_v44 = vand.u32 4294901760, %v2814_v40  ;;  %v1277_v33 = vand.u32 4294901760, %v1276_v58  ;;  %2283 = vmatpush3.bf16.msra.mxu1 %v2282_v25 }
  0x5a   : > { %v2284_v21 = vpack.c.bf16 %v1270_v19, %v1263_v18  ;;  %v1164_v27 = vsub.f32 %v3127_v20, %v1163_v60  ;;  %v1284_v12 = vand.u32 4294901760, %v1283_v30  ;;  %v1171_v7 = vsub.f32 %v3142_v59, %v1170_v31 }
  0x5b   : > { %v2212_v4 = vpack.c.bf16 %v3606_v44, %v3605_v50  ;;  %v2286_v29 = vpack.c.bf16 %v1158_v52, %v1151_v14  ;;  %623 = vmatmul.mubr.f32.gmra.mrb[2].mxu0 %v3032_v9  ;;  %v3608_v39 = vand.u32 4294901760, %v2824_v45  ;;  %v3609_v40 = vand.u32 4294901760, %v2826_v46  ;;  %v3615_v46 = vld [vmem:[#allocation6_spill] sm:$0xff] }
  0x5c   : > { %2285 = vmatprep.subr.bf16.mxu1 %v2284_v21  ;;  %v1165_v53 = vand.u32 4294901760, %v1164_v27  ;;  %2211 = vmatpush1.bf16.msra.mxu0 %v3607_v55  ;;  %v2288_v19 = vpack.c.bf16 %v1284_v12, %v1277_v33  ;;  %v1172_v58 = vand.u32 4294901760, %v1171_v7  ;;  %v3610_v52 = vand.u32 4294901760, %v2860_v23  ;;  %v3618_v23 = vld [vmem:[#allocation23_spill] sm:$0xff] }
  0x5d   : > { %701 = vmatprep.mubr.f32.mxu0 %v3595_v16  ;;  %v2214_v18 = vpack.c.bf16 %v3609_v40, %v3608_v39  ;;  %2213 = vmatprep.subr.bf16.mxu0 %v2212_v4  ;;  %v3611_v14 = vand.u32 4294901760, %v2862_v5  ;;  %v3612_v27 = vand.u32 4294901760, %v3019_v11  ;;  %v3613_v50 = vand.u32 4294901760, %v2864_v10 }
  0x5e   : > { %2287 = vmatpush3.bf16.msra.mxu1 %v2286_v29  ;;  %v2290_v25 = vpack.c.bf16 %v1172_v58, %v1165_v53  ;;  %v3614_v45 = vand.u32 4294901760, %v2888_v51  ;;  %v3616_v33 = vand.u32 4294901760, %v3615_v46  ;;  %v3617_v12 = vand.u32 4294901760, %v2684_v24  ;;  %v3627_v58 = vld [vmem:[#allocation12_spill] sm:$0xff] }
  0x5f   : > { %v2216_v30 = vpack.c.bf16 %v3611_v14, %v3610_v52  ;;  %705 = vmatmul.mubr.f32.vlgmr.msra.gmra.mrb[0].mxu0 %v3612_v27  ;;  %2289 = vmatprep.subr.bf16.mxu1 %v2288_v19  ;;  %2484 = vlog2.f32 %v3618_v23  ;;  %v3619_v5 = vand.u32 4294901760, %v2687_v28  ;;  %v3620_v11 = vand.u32 4294901760, %v2695_v34 }
  0x60   : > { %v2218_v44 = vpack.c.bf16 %v3614_v45, %v3613_v50  ;;  %v3208_v4 = vpack.c.bf16 %v3617_v12, %v3616_v33  ;;  %2215 = vmatpush1.bf16.msra.mxu0 %v2214_v18  ;;  %710 = vmatprep.mubr.f32.mxu0 %v3595_v16  ;;  %v3621_v51 = vand.u32 4294901760, %v2698_v35  ;;  %v3622_v29 = vand.u32 4294901760, %v2712_v41 }
  0x61   : > { %v3216_v10 = vpack.c.bf16 %v3620_v11, %v3619_v5  ;;  %v3623_v7 = vand.u32 4294901760, %v2714_v42  ;;  %v3624_v53 = vand.u32 4294901760, %v2716_v43  ;;  %2217 = vmatprep.subr.bf16.mxu0 %v2216_v30  ;;  %v3625_v40 = vand.u32 4294901760, %v2726_v47 }
  0x62   : > { %v3222_v21 = vpack.c.bf16 %v3622_v29, %v3621_v51  ;;  %v3626_v18 = vand.u32 4294901760, %v2728_v48  ;;  %v3628_v52 = vand.u32 4294901760, %v3627_v58  ;;  %v3629_v14 = vand.u32 4294901760, %v2755_v63  ;;  %2291 = vmatpush3.bf16.msra.mxu1 %v2290_v25 }
  0x63   : > { %v3228_v39 = vpack.c.bf16 %v3624_v53, %v3623_v7  ;;  %v3630_v50 = vand.u32 4294901760, %v2757_v0  ;;  %v3631_v45 = vand.u32 4294901760, %v2759_v1  ;;  %v3632_v30 = vand.u32 4294901760, %v2761_v2 }
  0x64   : > { %v3234_v19 = vpack.c.bf16 %v3626_v18, %v3625_v40  ;;  %v3240_v27 = vpack.c.bf16 %v3629_v14, %v3628_v52  ;;  %v3633_v12 = vand.u32 4294901760, %v2771_v6  ;;  %v3634_v5 = vand.u32 4294901760, %v2775_v8  ;;  %2219 = vmatpush1.bf16.msra.mxu0 %v2218_v44 }
  0x65   : > { %v3246_v33 = vpack.c.bf16 %v3631_v45, %v3630_v50  ;;  %v3635_v11 = vand.u32 4294901760, %v2785_v17  ;;  %v3636_v29 = vand.u32 4294901760, %v2808_v37  ;;  %v3637_v7 = vand.u32 4294901760, %v2810_v38  ;;  %2221 = vmatprep.subr.bf16.mxu0 %v2795_v26 }
  0x66   : > { %v3252_v23 = vpack.c.bf16 %v3633_v12, %v3632_v30  ;;  %v3638_v40 = vand.u32 4294901760, %v2836_v54  ;;  %v3639_v18 = vand.u32 4294901760, %v2841_v61  ;;  %v3640_v25 = vand.u32 4294901760, %v2848_v15  ;;  %v3643_v30 = vld [vmem:[#allocation5_spill] sm:$0xff] }
  0x67   : > { %v3258_v51 = vpack.c.bf16 %v3635_v11, %v3634_v5  ;;  %v3264_v53 = vpack.c.bf16 %v3637_v7, %v3636_v29  ;;  %v3641_v14 = vand.u32 4294901760, %v2850_v3  ;;  %v3642_v45 = vand.u32 4294901760, %v3032_v9  ;;  %2325 = vmatprep.subr.bf16.mxu1 %v3643_v30 }
  0x68   : > { %v3270_v52 = vpack.c.bf16 %v3639_v18, %v3638_v40  ;;  %v3644_v12 = vand.u32 4294901760, %v2890_v57  ;;  %v3645_v5 = vand.u32 4294901760, %v2919_v49  ;;  %v3646_v29 = vand.u32 4294901760, %v2921_v36 }
  0x69   : > { %v3276_v50 = vpack.c.bf16 %v3641_v14, %v3640_v25  ;;  %714 = vmatmul.mubr.f32.gmra.mrb[2].mxu0 %v3642_v45  ;;  %v3647_v7 = vand.u32 4294901760, %v2923_v22  ;;  %v3648_v18 = vand.u32 4294901760, %v2929_v32  ;;  %v3298_v9 = vpack.c.bf16 %v1170_v31, %v1163_v60  ;;  %v3649_v14 = vld [vmem:[#allocation30_spill] sm:$0xff]  ;;  %v3650_v45 = vld [vmem:[#allocation7_spill] sm:$0xff]  ;;  %v2485_v44 = vpop.eup %2484  ;;  %v3655_v31 = vld [vmem:[#allocation9_spill] sm:$0xff] }
  0x6a   : > { %v3285_v11 = vpack.c.bf16 %v3645_v5, %v3644_v12  ;;  %808 = vmatprep.mubr.f32.mxu0 %v3595_v16  ;;  %1289 = vmatmul.mubr.f32.vlgmr.msra.gmra.mrb[2].mxu1 %v3649_v14  ;;  %v3651_v12 = vld [vmem:[#allocation31_spill] sm:$0xff]  ;;  %v2292_v26 = vpack.c.bf16 %v2684_v24, %v3615_v46  ;;  %v1813_v60 = vmul.f32 0.6931472, %v2485_v44  ;;  %v2296_v24 = vpack.c.bf16 %v2712_v41, %v2698_v35  ;;  %v3659_v46 = vld [vmem:[#allocation13_spill] sm:$0xff] }
  0x6b   : > { %v3291_v40 = vpack.c.bf16 %v3647_v7, %v3646_v29  ;;  %v3295_v25 = vpack.c.bf16 %v1282_v56, %v3648_v18  ;;  %2327 = vmatpush3.bf16.msra.mxu1 %v3650_v45  ;;  %v3652_v5 = vand.u32 4294901760, %v3651_v12  ;;  %v3653_v29 = vld [vmem:[#allocation8_spill] sm:$0xff]  ;;  %v3654_v56 = vld [vmem:[#allocation17_spill] sm:$0xff]  ;;  %v3657_v18 = vld [vmem:[#allocation10_spill] sm:$0xff]  ;;  %v2302_v41 = vpack.c.bf16 %v2755_v63, %v3627_v58 }
  0x6c   : > { %2329 = vmatprep.subr.bf16.mxu1 %v3653_v29  ;;  %v3656_v7 = vld [vmem:[#allocation33_spill] sm:$0xff]  ;;  %v3661_v35 = vld [vmem:[#allocation15_spill] sm:$0xff]  ;;  %v3665_v63 = vld [vmem:[#allocation22_spill] sm:$0xff] }
  0x6d   : > { %1531 = vmatprep.mubr.f32.mxu1 %v3652_v5  ;;  %810 = vmatmul.mubr.f32.vlgmr.msra.gmra.mrb[0].mxu0 %v3007_v13  ;;  %v2294_v5 = vpack.c.bf16 %v2695_v34, %v2687_v28  ;;  %v2300_v28 = vpack.c.bf16 %v2728_v48, %v2726_v47  ;;  %v3660_v34 = vld [vmem:[#allocation14_spill] sm:$0xff]  ;;  %v2306_v47 = vpack.c.bf16 %v2771_v6, %v2761_v2  ;;  %v3666_v58 = vld [vmem:[#allocation24_spill] sm:$0xff] }
  0x6e   : > { %2223 = vmatpush1.bf16.msra.mxu0 %v3654_v56  ;;  %815 = vmatprep.mubr.f32.mxu0 %v3595_v16  ;;  %v1814_v56 = vsel %vm311_vm0, %v1813_v60, 0.0  ;;  %v2308_v48 = vpack.c.bf16 %v2785_v17, %v2775_v8  ;;  %v2314_v2 = vpack.c.bf16 %v2850_v3, %v2848_v15  ;;  %v2316_v6 = vpack.c.bf16 %v2919_v49, %v2890_v57  ;;  %v3668_v8 = vld [vmem:[#allocation28_spill] sm:$0xff]  ;;  %v3672_v15 = vld [vmem:[#allocation29_spill] sm:$0xff] }
  0x6f   : > { %2225 = vmatprep.subr.bf16.mxu0 %v3604_v62  ;;  %2331 = vmatpush3.bf16.msra.mxu1 %v3655_v31  ;;  %v3658_v62 = vld [vmem:[#allocation11_spill] sm:$0xff]  ;;  %v2318_v17 = vpack.c.bf16 %v2923_v22, %v2921_v36  ;;  %v2322_v57 = vpack.c.bf16 %v3142_v59, %v3127_v20 }
  0x70   : > { %2333 = vmatprep.subr.bf16.mxu1 %v3657_v18  ;;  %1815 = vadd.xlane.f32.xlu0 %v1814_v56 }
  0x71   : > { %817 = vmatmul.mubr.f32.gmra.mrb[2].mxu0 %v3656_v7 }
  0x72   : > { %2227 = vmatpush1.bf16.msra.mxu0 %v3607_v55  ;;  %895 = vmatprep.mubr.f32.mxu0 %v3595_v16  ;;  %v2298_v55 = vpack.c.bf16 %v2716_v43, %v2714_v42  ;;  %v2304_v42 = vpack.c.bf16 %v2759_v1, %v2757_v0  ;;  %v3662_v43 = vld [vmem:[#allocation16_spill] sm:$0xff]  ;;  %v2310_v0 = vpack.c.bf16 %v2810_v38, %v2808_v37  ;;  %v3669_v37 = vld [vmem:[#allocation34_spill] sm:$0xff] }
  0x73   : > { %2293 = vmatprep.subr.bf16.mxu0 %v2292_v26  ;;  %2335 = vmatpush3.bf16.msra.mxu1 %v3658_v62  ;;  %v2312_v1 = vpack.c.bf16 %v2841_v61, %v2836_v54  ;;  %v2320_v38 = vpack.c.bf16 %v3669_v37, %v2929_v32  ;;  %v3670_v54 = vld [vmem:[#allocation32_spill] sm:$0xff] }
  0x74   : > { %2337 = vmatprep.subr.bf16.mxu1 %v3659_v46  ;;  %v3671_v61 = vand.u32 4294901760, %v3670_v54 }
  0x75   : > { %897 = vmatmul.mubr.f32.vlgmr.msra.gmra.mrb[0].mxu0 %v3007_v13  ;;  %v3663_v13 = vld [vmem:[#allocation18_spill] sm:$0xff] }
  0x76   : > { %2295 = vmatpush3.bf16.msra.mxu0 %v2294_v5  ;;  %902 = vmatprep.mubr.f32.mxu0 %v3595_v16  ;;  %v3664_v16 = vld [vmem:[#allocation19_spill] sm:$0xff] }
  0x77   : > { %2297 = vmatprep.subr.bf16.mxu0 %v2296_v24  ;;  %2339 = vmatpush3.bf16.msra.mxu1 %v3660_v34 }
  0x78   : > { %2341 = vmatprep.subr.bf16.mxu1 %v3661_v35 }
  0x79   : > { %904 = vmatmul.mubr.f32.gmra.mrb[2].mxu0 %v3656_v7 }
  0x7a   : > { %2299 = vmatpush3.bf16.msra.mxu0 %v2298_v55  ;;  %1424 = vmatprep.mubr.f32.mxu0 %v3651_v12  ;;  %v3667_v12 = vld [vmem:[#allocation25_spill] sm:$0xff] }
  0x7b   : > { %2301 = vmatprep.subr.bf16.mxu0 %v2300_v28  ;;  %2343 = vmatpush3.bf16.msra.mxu1 %v3662_v43 }
  0x7c   : > { %2345 = vmatprep.subr.bf16.mxu1 %v3663_v13 }
  0x7e   : > { %2303 = vmatpush3.bf16.msra.mxu0 %v2302_v41 }
  0x7f   : > { %2305 = vmatprep.subr.bf16.mxu0 %v2304_v42  ;;  %2347 = vmatpush3.bf16.msra.mxu1 %v3664_v16 }
  0x80   : > { %2349 = vmatprep.subr.bf16.mxu1 %v3665_v63 }
  0x82   : > { %2307 = vmatpush3.bf16.msra.mxu0 %v2306_v47 }
  0x83   : > { %2309 = vmatprep.subr.bf16.mxu0 %v2308_v48  ;;  %2351 = vmatpush3.bf16.msra.mxu1 %v3666_v58 }
  0x84   : > { %2353 = vmatprep.subr.bf16.mxu1 %v3667_v12 }
  0x86   : > { %2311 = vmatpush3.bf16.msra.mxu0 %v2310_v0 }
  0x87   : > { %2313 = vmatprep.subr.bf16.mxu0 %v2312_v1  ;;  %2355 = vmatpush3.bf16.msra.mxu1 %v3668_v8 }
  0x88   : > { %2389 = vmatprep.subr.bf16.mxu1 %v3643_v30 }
  0x8a   : > { %2315 = vmatpush3.bf16.msra.mxu0 %v2314_v2  ;;  %1535 = vmatmul.mubr.f32.vlgmr.msra.gmra.mrb[4].mxu1 %v3671_v61 }
  0x8b   : > { %2317 = vmatprep.subr.bf16.mxu0 %v2316_v6  ;;  %2391 = vmatpush3.bf16.msra.mxu1 %v3650_v45 }
  0x8c   : > { %1805 = vmatprep.mubr.f32.mxu1 %v3672_v15  ;;  %2393 = vmatprep.subr.bf16.mxu1 %v3653_v29 }
  0x8e   : > { %2319 = vmatpush3.bf16.msra.mxu0 %v2318_v17 }
  0x8f   : > { %2321 = vmatprep.subr.bf16.mxu0 %v2320_v38  ;;  %2395 = vmatpush3.bf16.msra.mxu1 %v3655_v31 }
  0x90   : > { %2397 = vmatprep.subr.bf16.mxu1 %v3657_v18 }
  0x92   : > { %2323 = vmatpush3.bf16.msra.mxu0 %v2322_v57 }
  0x93   : > { %2357 = vmatprep.subr.bf16.mxu0 %v3208_v4  ;;  %2399 = vmatpush3.bf16.msra.mxu1 %v3658_v62 }
  0x94   : > { %2401 = vmatprep.subr.bf16.mxu1 %v3659_v46 }
  0x95   : > { %1427 = vmatmul.mubr.f32.vlgmr.msra.gmra.mrb[4].mxu0 %v3670_v54 }
  0x96   : > { %2359 = vmatpush3.bf16.msra.mxu0 %v3216_v10  ;;  %1701 = vmatprep.mubr.f32.mxu0 %v3672_v15 }
  0x97   : > { %2361 = vmatprep.subr.bf16.mxu0 %v3222_v21  ;;  %2403 = vmatpush3.bf16.msra.mxu1 %v3660_v34 }
  0x98   : > { %2405 = vmatprep.subr.bf16.mxu1 %v3661_v35 }
  0x9a   : > { %2363 = vmatpush3.bf16.msra.mxu0 %v3228_v39  ;;  %v3673_v39 = vld [vmem:[#allocation27_spill] sm:$0xff] }
  0x9b   : > { %2365 = vmatprep.subr.bf16.mxu0 %v3234_v19  ;;  %2407 = vmatpush3.bf16.msra.mxu1 %v3662_v43 }
  0x9c   : > { %2409 = vmatprep.subr.bf16.mxu1 %v3663_v13 }
  0x9e   : > { %2367 = vmatpush3.bf16.msra.mxu0 %v3240_v27 }
  0x9f   : > { %2369 = vmatprep.subr.bf16.mxu0 %v3246_v33  ;;  %2411 = vmatpush3.bf16.msra.mxu1 %v3664_v16  ;;  %v3674_v33 = vld [vmem:[#allocation26_spill] sm:$0xff] }
  0xa0   : > { %2413 = vmatprep.subr.bf16.mxu1 %v3665_v63 }
  0xa2   : > { %2371 = vmatpush3.bf16.msra.mxu0 %v3252_v23 }
  0xa3   : > { %2373 = vmatprep.subr.bf16.mxu0 %v3258_v51  ;;  %2415 = vmatpush3.bf16.msra.mxu1 %v3666_v58 }
  0xa4   : > { %2417 = vmatprep.subr.bf16.mxu1 %v3667_v12 }
  0xa6   : > { %2375 = vmatpush3.bf16.msra.mxu0 %v3264_v53 }
  0xa7   : > { %2377 = vmatprep.subr.bf16.mxu0 %v3270_v52  ;;  %2419 = vmatpush3.bf16.msra.mxu1 %v3668_v8 }
  0xaa   : > { %2379 = vmatpush3.bf16.msra.mxu0 %v3276_v50  ;;  %1807 = vmatmul.mubr.f32.vlgmr.msra.gmra.mrb[6].mxu1 %v3649_v14 }
  0xab   : > { %2381 = vmatprep.subr.bf16.mxu0 %v3285_v11 }
  0xae   : > { %2383 = vmatpush3.bf16.msra.mxu0 %v3291_v40 }
  0xaf   : > { %2385 = vmatprep.subr.bf16.mxu0 %v3295_v25 }
  0xb2   : > { %2387 = vmatpush3.bf16.msra.mxu0 %v3298_v9 }
  0xb5   : > { %1703 = vmatmul.mubr.f32.vlgmr.msra.gmra.mrb[6].mxu0 %v3649_v14 }
 0x114   : > { %v2002_v22 = vpop.f32.mrb[0].mxu1 }
 0x115   : > { %v2003_v36 = vpop.f32.mrb[1].mxu1 }
 0x116   : > { %v2004_v3 = vadd.f32 %v2003_v36, %v2002_v22 }
 0x13d   : > { %v2037_v49 = vpop.f32.mrb[2].mxu1 }
 0x13e   : > { %v2038_v32 = vpop.f32.mrb[3].mxu1 }
 0x13f   : > { %v2039_v20 = vadd.f32 %v2038_v32, %v2037_v49 }
 0x141   : > { %v1291_v59 = vadd.f32 %v2039_v20, %v2004_v3 }
 0x148   : > { %v898_v4 = vpop.f32.mrb[0].mxu0 }
 0x149   : > { %v900_v10 = vpop.f32.mrb[1].mxu0 }
 0x14c   : > { %v905_v21 = vpop.f32.mrb[2].mxu0 }
 0x14d   : > { %v910_v19 = vmul.f32 %v905_v21, %v3673_v39  ;;  %v907_v27 = vpop.f32.mrb[3].mxu0 }
 0x14e   : > { %v911_v23 = vmul.f32 %v907_v27, %v3674_v33 }
 0x14f   : > { %v912_v51 = vadd.f32 %v910_v19, %v898_v4 }
 0x150   : > { %v913_v53 = vadd.f32 %v911_v23, %v900_v10 }
 0x151   : > { %914 = vst [vmem:[%s271_s18] sm:$0xff] %v912_v51 }
 0x152   : > { %915 = vst [vmem:[%s271_s18 + $0x8] sm:$0xff] %v913_v53 }
 0x153   : > { %2499 = shalt.err (!%p2496_p3)
}
 0x154   : > { %s2500_s13 = scalar_lea.hbm %s3409_s26, 256  ;;  %s2504_s16 = scalar_lea.hbm %s3460_s5, 512 }
 0x155   : > { %p2501_p4 = scmp.ne.s32.totalorder %s3409_s26, %s2500_s13  ;;  %p2505_p9 = scmp.lt.u32.totalorder %s3409_s26, %s3460_s5 }
 0x156   : > { %p2506_p10 = scmp.lt.u32.totalorder %s2504_s16, %s2500_s13  ;;  %p2508_p12 = scmp.lt.u32.totalorder %s2500_s13, %s3409_s26 }
 0x157   : > { %p2502_p7 = pnand %p2501_p4, %p2625_p5 }
 0x158   : > { %p2507_p11 = por %p2506_p10, %p2505_p9 }
 0x159   : > { %p2503_p8 = pneg %p2502_p7 }
 0x15a   : > { %p2509_p13 = por %p2508_p12, %p2507_p11 }
 0x15c   : > { %p2510_p0 = pnand %p2509_p13, %p2503_p8 }
 0x15e   : > { %2513 = shalt.err (!%p2510_p0)
}
 0x15f   : > { %2440 = dma.vmem_to_hbm [thread:$0]  (%p2625_p5), %s3411_s19, 256, %s3409_s26, %s1824_s28   ;;  %v2107_v52 = vpop.f32.mrb[4].mxu1  ;;  %v1816_v7 = vpop.xlane.xlu0 %1815  ;;  %vm1821_vm1 = vcmask 64512  }
 0x160   : > { %v2108_v50 = vpop.f32.mrb[5].mxu1  ;;  %v1818_v56 = vmul.f32 0.5, %v1816_v7  ;;  %s294_s20 = scalar_lea.vmem %s3461_s6, %s2793_s29 }
 0x161   : > { %v2109_v30 = vadd.f32 %v2108_v50, %v2107_v52 }
 0x168   : > { %v2072_v11 = vpop.f32.mrb[4].mxu0 }
 0x169   : > { %v2073_v40 = vpop.f32.mrb[5].mxu0 }
 0x16a   : > { %v2074_v25 = vadd.f32 %v2073_v40, %v2072_v11 }
 0x16c   : > { %v1429_v9 = vadd.f32 %v2074_v25, %v1291_v59 }
 0x16e   : > { %v1537_v14 = vadd.f32 %v2109_v30, %v1429_v9 }
 0x17d   : > { %v2177_v45 = vpop.f32.mrb[6].mxu1 }
 0x17e   : > { %v2178_v29 = vpop.f32.mrb[7].mxu1 }
 0x17f   : > { %v2179_v44 = vadd.f32 %v2178_v29, %v2177_v45 }
 0x188   : > { %v2142_v26 = vpop.f32.mrb[6].mxu0 }
 0x189   : > { %v2143_v31 = vpop.f32.mrb[7].mxu0 }
 0x18a   : > { %v2144_v60 = vadd.f32 %v2143_v31, %v2142_v26 }
 0x18c   : > { %v1705_v18 = vadd.f32 %v2144_v60, %v1537_v14 }
 0x18e   : > { %v1809_v5 = vadd.f32 %v2179_v44, %v1705_v18 }
 0x190   : > { %v1817_v24 = vmul.f32 -0.5, %v1809_v5 }
 0x192   : > { %v1819_v62 = vadd.f32 %v1818_v56, %v1817_v24 }
 0x194   : > { %v1962_v46 = vadd.f32 -29.406033, %v1819_v62 }
 0x196   : > { %1822 = vst.msk [vmem:[%s294_s20] sm:$0xff] %vm1821_vm1, %v1962_v46 }
 0x197 PF: > { %p2446_p5 = scmp.ge.s32.totalorder %s2548_s24, 2  ;;  %s1857_s12 = sand.u32 1, %s2536_s21  }
 0x198   : > { %s1858_s26 = scalar_lea.sflag [#allocation3], %s1857_s12 }
 0x199   : > { %p2443_p1 = pnand %p2446_p5, %p2629_p6 }
 0x19b   : > { %2531 = dma.done.wait (!%p2443_p1), %s1858_s26, 256  }
 0x19c   : > { %2533 = vsyncadd (!%p2443_p1), %s1858_s26, 4294967040  ;;  %p17_p2 = scmp.ge.s32.totalorder %s2612_s27, 4   ;;  %s3675_s21 = smov %s2540_s22 }
 0x19d   : > { %s3676_s22 = smov %s2544_s23  ;;  %s3677_s23 = smov %s2623_s30 }
 0x19e   : > { %s3678_s24 = smov %s2612_s27  ;;  %19 = sbr.rel (!%p17_p2) target bundleno = 3 (0x3), region = 93 }
 0x1a5   :  { %1870 = vsyncpa [#allocation3], 1 }
 0x1a6   :  { %1872 = vsyncpa [#allocation3 + $0x1], 1 }

</bundles_post_ra>
